<compile_context>
chip_gen: v7x
topology: tpu7x:2x2x1
jax: 0.10.0
libtpu: 0.0.40
codegen_flags: <defaults>
</compile_context>

<pallas_src>
import functools

import jax
import jax.numpy as jnp
from jax.experimental import pallas as pl
from jax.experimental.pallas import tpu as pltpu


def _round_up(x, m):
    return (x + m - 1) // m * m


def _aux_head_kernel(x_ref, wt_ref, b_ref, logits_ref, probs_ref, *, approx_recip):
    # x_ref:      (TB, K_pad)      VMEM
    # wt_ref:     (K_pad, N_pad)   VMEM, pre-transposed / pre-padded weight
    # b_ref:      (1,  N_pad)      VMEM, padded features filled with -1e30
    # logits_ref: (TB, N_pad)      VMEM (lane-dense: N_pad % 128 == 0)
    # probs_ref:  (TB, N_pad)      VMEM
    logits = jnp.dot(x_ref[...], wt_ref[...], preferred_element_type=jnp.float32)
    logits = logits + b_ref[...].astype(jnp.float32)

    # Numerically-stable softmax over features (PyTorch Softmax(dim=1) on 2-D).
    # Padded feature columns carry bias -1e30 -> exp underflows to exactly 0,
    # so the softmax over the real features is unchanged.
    m = jnp.max(logits, axis=-1, keepdims=True)
    e = jnp.exp(logits - m)
    denom = jnp.sum(e, axis=-1, keepdims=True)
    if approx_recip:
        probs = e * pl.reciprocal(denom, approx=True)   # EUP vrcp slot
    else:
        probs = e / denom                               # exact; op is mem-bound anyway

    logits_ref[...] = logits.astype(logits_ref.dtype)
    probs_ref[...] = probs.astype(probs_ref.dtype)


def auxiliary_head(x, weight, bias, *, logits_dtype=None, probs_dtype=None,
                   approx_recip=False, max_batch_tile=2048):
    """x: (B, in_ch); weight: (num_aux, in_ch); bias: (num_aux,).

    Returns (logits, probs), each (B, num_aux), matching the PyTorch module.
    """
    B, in_ch = x.shape
    num_aux, in_ch_w = weight.shape
    assert in_ch_w == in_ch, "weight must be (num_aux, in_ch)"

    K_pad = _round_up(in_ch, 128)
    N_pad = _round_up(num_aux, 128)

    logits_dtype = jnp.dtype(logits_dtype or jnp.float32)
    probs_dtype = jnp.dtype(probs_dtype or jnp.float32)

    # One-time wrapper-side padding + weight transpose (weight/bias are
    # grid-resident afterwards, so this single HBM pass amortizes).
    x_p = x if in_ch == K_pad else jnp.pad(x, ((0, 0), (0, K_pad - in_ch)))
    w_p = jnp.pad(weight, ((0, N_pad - num_aux), (0, K_pad - in_ch)))
    wt = jnp.transpose(w_p)                                   # (K_pad, N_pad)
    b_p = jnp.pad(bias.astype(jnp.float32), (0, N_pad - num_aux),
                  constant_values=-1e30).reshape(1, N_pad)

    out_shape = (jax.ShapeDtypeStruct((B, N_pad), logits_dtype),
                 jax.ShapeDtypeStruct((B, N_pad), probs_dtype))

    kernel = functools.partial(_aux_head_kernel, approx_recip=approx_recip)

    cost = pl.CostEstimate(
        flops=2 * B * in_ch * num_aux,
        transcendentals=B * num_aux,
        bytes_accessed=(B * in_ch * x.dtype.itemsize
                        + num_aux * in_ch * weight.dtype.itemsize
                        + B * N_pad * (logits_dtype.itemsize + probs_dtype.itemsize)),
    )

    # Per-generation VMEM budget (v5e/v6e: 128 MiB physical, v7x: 64 MiB).
    try:
        vmem_physical = int(pltpu.get_tpu_info().vmem_capacity_bytes)
    except Exception:  # pragma: no cover - conservative fallback
        vmem_physical = 64 << 20
    budget = int(vmem_physical * 0.4)   # leave headroom for compiler scratch

    out_row_bytes = N_pad * (logits_dtype.itemsize + probs_dtype.itemsize)
    resident = 2 * (K_pad * N_pad * weight.dtype.itemsize + N_pad * 4)

    def tile_bytes(tb):
        # double-buffered x tile + 2 double-buffered output tiles + resident W/b
        return resident + 2 * tb * (K_pad * x.dtype.itemsize + out_row_bytes)

    grid_free_bytes = (B * K_pad * x.dtype.itemsize
                       + K_pad * N_pad * weight.dtype.itemsize + N_pad * 4
                       + B * out_row_bytes)

    if B <= 256 and grid_free_bytes <= budget:
        # Grid-free: whole problem VMEM-resident, no pipeline machinery.
        logits_p, probs_p = pl.pallas_call(
            kernel,
            out_shape=out_shape,
            in_specs=[pl.BlockSpec(memory_space=pltpu.MemorySpace.VMEM)] * 3,
            out_specs=(pl.BlockSpec(memory_space=pltpu.MemorySpace.VMEM),
                       pl.BlockSpec(memory_space=pltpu.MemorySpace.VMEM)),
            compiler_params=pltpu.CompilerParams(
                vmem_limit_bytes=min(max(grid_free_bytes + (4 << 20), 32 << 20),
                                     vmem_physical)),
            cost_estimate=cost,
        )(x_p, wt, b_p)
    else:
        # Tiled path: weight/bias VMEM-resident across the grid, x / outputs
        # streamed; batch axis "parallel" so v7x's 2 TensorCores split it.
        tb = min(max_batch_tile, 2048)
        while tb > 8 and tile_bytes(tb) > budget:
            tb //= 2
        tb = max(tb, 8)
        if pl.cdiv(B, tb) < 2:
            # Give the parallel axis >= 2 steps so megacore has work.
            tb = max(8, _round_up(pl.cdiv(B, 2), 8))
        vmem_limit = min(max(tile_bytes(tb) + (4 << 20), 32 << 20), vmem_physical)

        # Note: if B % tb != 0 the padded rows of the last tile run softmax on
        # unspecified data; Pallas masks the writeback so results are correct.
        logits_p, probs_p = pl.pallas_call(
            kernel,
            out_shape=out_shape,
            grid_spec=pltpu.PrefetchScalarGridSpec(
                num_scalar_prefetch=0,
                grid=(pl.cdiv(B, tb),),
                in_specs=[
                    pl.BlockSpec((tb, K_pad), lambda i: (i, 0)),
                    pl.BlockSpec((K_pad, N_pad), lambda i: (0, 0)),
                    pl.BlockSpec((1, N_pad), lambda i: (0, 0)),
                ],
                out_specs=(pl.BlockSpec((tb, N_pad), lambda i: (i, 0)),
                           pl.BlockSpec((tb, N_pad), lambda i: (i, 0))),
            ),
            compiler_params=pltpu.CompilerParams(
                dimension_semantics=("parallel",),
                vmem_limit_bytes=vmem_limit),
            cost_estimate=cost,
        )(x_p, wt, b_p)

    return logits_p[:, :num_aux], probs_p[:, :num_aux]


def _reference(x, weight, bias):
    logits = x @ weight.T + bias
    return logits, jax.nn.softmax(logits, axis=1)


if __name__ == "__main__":
    key = jax.random.PRNGKey(0)
    kx, kw, kb, kx2, kw2, kb2 = jax.random.split(key, 6)

    # --- Small demo consistent with the module: x_aux is (batch, in_ch). ---
    B, in_ch, num_aux = 8, 32, 8
    x = jax.random.normal(kx, (B, in_ch), dtype=jnp.float32)
    weight = jax.random.normal(kw, (num_aux, in_ch), dtype=jnp.float32) * 0.1
    bias = jax.random.normal(kb, (num_aux,), dtype=jnp.float32) * 0.1

    logits, probs = auxiliary_head(x, weight, bias)
    jax.block_until_ready((logits, probs))

    ref_logits, ref_probs = _reference(x, weight, bias)
    assert logits.shape == (B, num_aux) and probs.shape == (B, num_aux)
    assert jnp.allclose(logits, ref_logits, atol=1e-5), "logits mismatch (grid-free)"
    assert jnp.allclose(probs, ref_probs, atol=1e-5), "probs mismatch (grid-free)"

    # --- Also exercise the tiled (parallel-grid) path at a modest size. ---
    B2, in_ch2, num_aux2 = 640, 256, 10
    x2 = jax.random.normal(kx2, (B2, in_ch2), dtype=jnp.float32)
    weight2 = jax.random.normal(kw2, (num_aux2, in_ch2), dtype=jnp.float32) * 0.05
    bias2 = jax.random.normal(kb2, (num_aux2,), dtype=jnp.float32) * 0.05

    logits2, probs2 = auxiliary_head(x2, weight2, bias2)
    jax.block_until_ready((logits2, probs2))

    ref_logits2, ref_probs2 = _reference(x2, weight2, bias2)
    assert jnp.allclose(logits2, ref_logits2, atol=1e-4, rtol=1e-5), "logits mismatch (tiled)"
    assert jnp.allclose(probs2, ref_probs2, atol=1e-5), "probs mismatch (tiled)"

    print("KERNEL_OK")
</pallas_src>

<mosaic_0001>
module attributes {stable_mosaic.version = 11 : i64} {
  func.func @_aux_head_kernel(%arg0: memref<8x128xf32, #tpu.memory_space<vmem>>, %arg1: memref<128x128xf32, #tpu.memory_space<vmem>>, %arg2: memref<1x128xf32, #tpu.memory_space<vmem>>, %arg3: memref<8x128xf32, #tpu.memory_space<vmem>>, %arg4: memref<8x128xf32, #tpu.memory_space<vmem>>) attributes {dimension_semantics = [], scalar_prefetch = 0 : i64, scratch_operands = 0 : i64, tpu.core_type = #tpu.core_type<tc>} {
    %c0 = arith.constant 0 : index
    %c0_0 = arith.constant 0 : index
    %0 = vector.load %arg0[%c0, %c0_0] : memref<8x128xf32, #tpu.memory_space<vmem>>, vector<8x128xf32>
    %c0_1 = arith.constant 0 : index
    %c0_2 = arith.constant 0 : index
    %1 = vector.load %arg1[%c0_1, %c0_2] : memref<128x128xf32, #tpu.memory_space<vmem>>, vector<128x128xf32>
    %cst = arith.constant dense<0.000000e+00> : vector<8x128xf32>
    %2 = tpu.matmul %0, %1, %cst {dimension_numbers = #tpu.dot_dimension_numbers<[1], [0], [0], [1], [0, 0, 1, 1], [], []>} : vector<8x128xf32>, vector<128x128xf32>, vector<8x128xf32> -> vector<8x128xf32>
    %c0_3 = arith.constant 0 : index
    %c0_4 = arith.constant 0 : index
    %3 = vector.load %arg2[%c0_3, %c0_4] : memref<1x128xf32, #tpu.memory_space<vmem>>, vector<1x128xf32>
    %4 = vector.broadcast %3 : vector<1x128xf32> to vector<8x128xf32>
    %5 = arith.addf %2, %4 : vector<8x128xf32>
    %cst_5 = arith.constant dense<0xFF800000> : vector<8xf32>
    %6 = vector.multi_reduction <maximumf>, %5, %cst_5 [1] : vector<8x128xf32> to vector<8xf32>
    %7 = vector.shape_cast %6 : vector<8xf32> to vector<8x1xf32>
    %8 = vector.broadcast %7 : vector<8x1xf32> to vector<8x128xf32>
    %9 = arith.subf %5, %8 : vector<8x128xf32>
    %10 = math.exp %9 : vector<8x128xf32>
    %cst_6 = arith.constant dense<0.000000e+00> : vector<8xf32>
    %11 = vector.multi_reduction <add>, %10, %cst_6 [1] : vector<8x128xf32> to vector<8xf32>
    %12 = vector.shape_cast %11 : vector<8xf32> to vector<8x1xf32>
    %13 = vector.broadcast %12 : vector<8x1xf32> to vector<8x128xf32>
    %14 = arith.divf %10, %13 : vector<8x128xf32>
    %c0_7 = arith.constant 0 : index
    %c0_8 = arith.constant 0 : index
    %15 = vector.load %arg3[%c0_7, %c0_8] : memref<8x128xf32, #tpu.memory_space<vmem>>, vector<8x128xf32>
    tpu.vector_store %arg3[%c0_7, %c0_8], %5 {strides = array<i32>} : memref<8x128xf32, #tpu.memory_space<vmem>>, vector<8x128xf32>,
    %c0_9 = arith.constant 0 : index
    %c0_10 = arith.constant 0 : index
    %16 = vector.load %arg4[%c0_9, %c0_10] : memref<8x128xf32, #tpu.memory_space<vmem>>, vector<8x128xf32>
    tpu.vector_store %arg4[%c0_9, %c0_10], %14 {strides = array<i32>} : memref<8x128xf32, #tpu.memory_space<vmem>>, vector<8x128xf32>,
    return
  }
}

</mosaic_0001>

<bundles_post_ra>
// kernel: tpu_custom_call.1
= control target key start
LH: loop header
LB: loop body
LE: loop exit
PB: predicated region body
PF: predicated region fallthrough
CT: control target
= control target key end

     0   :  { %10 = vsyncpa [#allocation3], 0  ;;  %s457_s0 = inlined_call_operand.hbm [shape: f32[8,128], index: 0, kind: input, shape index: {}]   ;;  %s458_s1 = inlined_call_operand.hbm [shape: f32[128,128], index: 1, kind: input, shape index: {}]   ;;  %s459_s2 = inlined_call_operand.vmem [shape: f32[1,128], index: 2, kind: input, shape index: {}]   ;;  %s460_s3 = inlined_call_operand.hbm [shape: f32[8,128], index: 3, kind: output, shape index: {0}]   ;;  %s461_s4 = inlined_call_operand.hbm [shape: f32[8,128], index: 4, kind: output, shape index: {1}]  }
   0x1   :  { %11 = vsyncpa [#allocation6], 0 }
   0x2   :  { %12 = vsyncpa [#allocation4], 0 }
   0x3   :  { %13 = vsyncpa [#allocation9], 0  ;;  %s365_s15 = smov [#allocation2]   ;;  %s366_s17 = smov [#allocation5]  }
   0x4   :  { %s20_s16 = sshll.u32 %s365_s15, 4  ;;  %s29_s18 = sshll.u32 %s366_s17, 4  ;;  %s21_s16 = int_to_ptr.vmem [resolvable:$true] %s20_s16  ;;  %s399_s18 = int_to_ptr.vmem [resolvable:$true] %s29_s18 }
   0x5   :  { %s269_s21 = scalar_lea.hbm %s457_s0, 128 }
   0x6   :  { %p270_p0 = scmp.ne.s32.totalorder %s457_s0, %s269_s21  ;;  %p273_p1 = scmp.lt.u32.totalorder %s269_s21, %s457_s0 }
   0x8   :  { %p275_p2 = pnand %p273_p1, %p270_p0 }
   0xa   :  { %278 = shalt.err (!%p275_p2)
}
   0xb   :  { %s279_s26 = scalar_lea.vmem %s21_s16, 128  ;;  %p284_p4 = scmp.lt.s32.totalorder %s21_s16, %s21_s16 }
   0xc   :  { %p280_p3 = scmp.ne.s32.totalorder %s21_s16, %s279_s26  ;;  %p285_p5 = scmp.lt.s32.totalorder %s279_s26, %s279_s26 }
   0xe   :  { %p286_p6 = por %p285_p5, %p284_p4 }
  0x10   :  { %p287_p7 = pnand %p286_p6, %p280_p3 }
  0x12   :  { %290 = shalt.err (!%p287_p7)
}
  0x13   :  { %23 = dma.hbm_to_vmem [thread:$0]  %s457_s0, 128, %s21_s16, [#allocation3]  }
  0x14   :  { %s291_s5 = scalar_lea.hbm %s458_s1, 2048 }
  0x15   :  { %p292_p8 = scmp.ne.s32.totalorder %s458_s1, %s291_s5  ;;  %p295_p9 = scmp.lt.u32.totalorder %s291_s5, %s458_s1 }
  0x17   :  { %p297_p10 = pnand %p295_p9, %p292_p8 }
  0x19   :  { %300 = shalt.err (!%p297_p10)
}
  0x1a   :  { %s301_s10 = scalar_lea.vmem %s399_s18, 2048  ;;  %p306_p12 = scmp.lt.s32.totalorder %s399_s18, %s399_s18 }
  0x1b   :  { %p302_p11 = scmp.ne.s32.totalorder %s399_s18, %s301_s10  ;;  %p307_p13 = scmp.lt.s32.totalorder %s301_s10, %s301_s10 }
  0x1d   :  { %p308_p0 = por %p307_p13, %p306_p12 }
  0x1f   :  { %p309_p1 = pnand %p308_p0, %p302_p11 }
  0x21   :  { %312 = shalt.err (!%p309_p1)
}
  0x22   :  { %s367_s0 = smov 128   ;;  %s368_s11 = smov 8  }
  0x23   :  { %35 = dma.hbm_to_vmem [thread:$0]  %s458_s1, 2048, %s399_s18, [#allocation6], %s367_s0, %s367_s0, %s368_s11  }
  0x24   :  { %357 = dma.done.wait [#allocation3], 128  }
  0x25   :  { %358 = vsyncadd [#allocation3], 4294967168 }
  0x26   :  { %359 = dma.done.wait [#allocation6], 2048  }
  0x27   :  { %360 = vsyncadd [#allocation6], 4294965248  ;;  %v369_v0 = vmov 0.0|0.0   ;;  %vm370_vm0 = vmmov 0   ;;  %v371_v1 = vmov 0.0   ;;  %v45_v2 = vld [vmem:[#allocation5] sm:$0xff] }
  0x28   :  { %232 = vmatprep.subr.bf16.mxu0 %v369_v0  ;;  %229 = vmatprep.mubr.msk.f32.mxu0 %vm370_vm0, %v371_v1  ;;  %v46_v3 = vld [vmem:[#allocation5 + $0x8] sm:$0xff]  ;;  %v47_v4 = vld [vmem:[#allocation5 + $0x10] sm:$0xff]  ;;  %v48_v6 = vld [vmem:[#allocation5 + $0x18] sm:$0xff]  ;;  %s372_s15 = smov [#allocation7]  }
  0x29   :  { %v233_v5 = vpack.c.bf16 %v46_v3, %v45_v2  ;;  %v236_v7 = vpack.c.bf16 %v48_v6, %v47_v4  ;;  %v49_v8 = vld [vmem:[#allocation5 + $0x20] sm:$0xff]  ;;  %v50_v9 = vld [vmem:[#allocation5 + $0x28] sm:$0xff]  ;;  %v51_v11 = vld [vmem:[#allocation5 + $0x30] sm:$0xff]  ;;  %s155_s16 = sshll.u32 %s372_s15, 4  ;;  %s156_s16 = int_to_ptr.vmem [resolvable:$true] %s155_s16 }
  0x2a   :  { %v239_v10 = vpack.c.bf16 %v50_v9, %v49_v8  ;;  %v52_v12 = vld [vmem:[#allocation5 + $0x38] sm:$0xff]  ;;  %v53_v14 = vld [vmem:[#allocation5 + $0x40] sm:$0xff]  ;;  %v54_v15 = vld [vmem:[#allocation5 + $0x48] sm:$0xff]  ;;  %s313_s17 = scalar_lea.vmem %s156_s16, 128  ;;  %p318_p3 = scmp.lt.s32.totalorder %s156_s16, %s156_s16 }
  0x2b   :  { %234 = vmatpush3.bf16.msra.mxu0 %v233_v5  ;;  %v242_v13 = vpack.c.bf16 %v52_v12, %v51_v11  ;;  %v245_v16 = vpack.c.bf16 %v54_v15, %v53_v14  ;;  %v55_v17 = vld [vmem:[#allocation5 + $0x50] sm:$0xff]  ;;  %v56_v18 = vld [vmem:[#allocation5 + $0x58] sm:$0xff]  ;;  %v57_v20 = vld [vmem:[#allocation5 + $0x60] sm:$0xff]  ;;  %p314_p2 = scmp.ne.s32.totalorder %s156_s16, %s313_s17  ;;  %p319_p4 = scmp.lt.s32.totalorder %s313_s17, %s313_s17 }
  0x2c   :  { %235 = vmatprep.subr.bf16.mxu0 %v369_v0  ;;  %v248_v19 = vpack.c.bf16 %v56_v18, %v55_v17  ;;  %v58_v21 = vld [vmem:[#allocation5 + $0x68] sm:$0xff]  ;;  %v59_v23 = vld [vmem:[#allocation5 + $0x70] sm:$0xff]  ;;  %v60_v24 = vld [vmem:[#allocation5 + $0x78] sm:$0xff] }
  0x2d   :  { %v251_v22 = vpack.c.bf16 %v58_v21, %v57_v20  ;;  %v254_v25 = vpack.c.bf16 %v60_v24, %v59_v23  ;;  %v44_v26 = vld [vmem:[#allocation2] sm:$0xff]  ;;  %p320_p5 = por %p319_p4, %p318_p3 }
  0x2e   :  { %v179_v27 = vld [vmem:[%s459_s2] ss:$0 sm:$0xff] }
  0x2f   :  { %237 = vmatpush3.bf16.msra.mxu0 %v236_v7  ;;  %p321_p6 = pnand %p320_p5, %p314_p2 }
  0x30   :  { %238 = vmatprep.subr.bf16.mxu0 %v369_v0 }
  0x33   :  { %240 = vmatpush3.bf16.msra.mxu0 %v239_v10 }
  0x34   :  { %241 = vmatprep.subr.bf16.mxu0 %v369_v0 }
  0x37   :  { %243 = vmatpush3.bf16.msra.mxu0 %v242_v13 }
  0x38   :  { %244 = vmatprep.subr.bf16.mxu0 %v369_v0 }
  0x3b   :  { %246 = vmatpush3.bf16.msra.mxu0 %v245_v16 }
  0x3c   :  { %247 = vmatprep.subr.bf16.mxu0 %v369_v0 }
  0x3f   :  { %249 = vmatpush3.bf16.msra.mxu0 %v248_v19 }
  0x40   :  { %250 = vmatprep.subr.bf16.mxu0 %v369_v0 }
  0x43   :  { %252 = vmatpush3.bf16.msra.mxu0 %v251_v22 }
  0x44   :  { %253 = vmatprep.subr.bf16.mxu0 %v369_v0 }
  0x47   :  { %255 = vmatpush3.bf16.msra.mxu0 %v254_v25 }
  0x4a   :  { %230 = vmatmul.mubr.f32.vlgmr.msra.gmra.mrb[0].mxu0 %v44_v26 }
 0x11d   :  { %v134_v28 = vpop.f32.mrb[0].mxu0 }
 0x11e   :  { %v135_v29 = vadd.f32 %v179_v27, %v134_v28  ;;  %v231_v30 = vpop.f32.mrb[1].mxu0 }
 0x120   :  { %147 = vst [vmem:[#allocation7] sm:$0xff] %v135_v29  ;;  %138 = vmax.xlane.f32.xlu0 %v135_v29 }
 0x1ad   :  { %v139_v31 = vpop.xlane.xlu0 %138 }
 0x1ae   :  { %v140_v32 = vsub.f32 %v135_v29, %v139_v31 }
 0x1b0   :  { %v141_v33 = vmul.f32 1.442695, %v140_v32 }
 0x1b2   :  { %265 = vpow2.f32 %v141_v33 }
 0x1bc   :  { %v266_v34 = vpop.eup %265 }
 0x1bd   :  { %143 = vadd.xlane.f32.xlu0 %v266_v34 }
 0x1be   :  { %324 = shalt.err (!%p321_p6)
}
 0x1bf   :  { %s325_s19 = scalar_lea.hbm %s460_s3, 128 }
 0x1c0   :  { %p326_p7 = scmp.ne.s32.totalorder %s460_s3, %s325_s19  ;;  %p329_p8 = scmp.lt.u32.totalorder %s325_s19, %s460_s3 }
 0x1c2   :  { %p331_p9 = pnand %p329_p8, %p326_p7 }
 0x1c4   :  { %334 = shalt.err (!%p331_p9)
}
 0x1c5   :  { %158 = dma.vmem_to_hbm [thread:$0]  %s156_s16, 128, %s460_s3, [#allocation4]  }
 0x1c6   :  { %s373_s26 = smov [#allocation8]  }
 0x1c7   :  { %s165_s27 = sshll.u32 %s373_s26, 4  ;;  %s166_s27 = int_to_ptr.vmem [resolvable:$true] %s165_s27 }
 0x1c8   :  { %s335_s28 = scalar_lea.vmem %s166_s27, 128  ;;  %p340_p11 = scmp.lt.s32.totalorder %s166_s27, %s166_s27 }
 0x1c9   :  { %p336_p10 = scmp.ne.s32.totalorder %s166_s27, %s335_s28  ;;  %p341_p12 = scmp.lt.s32.totalorder %s335_s28, %s335_s28 }
 0x1cb   :  { %p342_p13 = por %p341_p12, %p340_p11 }
 0x1cd   :  { %p343_p0 = pnand %p342_p13, %p336_p10 }
 0x24a   :  { %v144_v35 = vpop.xlane.xlu0 %143 }
 0x24b   :  { %267 = vrcp.f32 %v144_v35 }
 0x255   :  { %v268_v36 = vpop.eup %267 }
 0x256   :  { %v146_v37 = vmul.f32 %v268_v36, %v266_v34 }
 0x258   :  { %148 = vst [vmem:[#allocation8] sm:$0xff] %v146_v37 }
 0x259   :  { %346 = shalt.err (!%p343_p0)
}
 0x25a   :  { %s347_s5 = scalar_lea.hbm %s461_s4, 128 }
 0x25b   :  { %p348_p1 = scmp.ne.s32.totalorder %s461_s4, %s347_s5  ;;  %p351_p2 = scmp.lt.u32.totalorder %s347_s5, %s461_s4 }
 0x25d   :  { %p353_p3 = pnand %p351_p2, %p348_p1 }
 0x25f   :  { %356 = shalt.err (!%p353_p3)
}
 0x260   :  { %168 = dma.vmem_to_hbm [thread:$0]  %s166_s27, 128, %s461_s4, [#allocation9]  }
 0x261   :  { %361 = dma.done.wait [#allocation4], 128  }
 0x262   :  { %362 = vsyncadd [#allocation4], 4294967168 }
 0x263   :  { %363 = dma.done.wait [#allocation9], 128  }
 0x264   :  { %364 = vsyncadd [#allocation9], 4294967168 }
 0x265   :  { %175 = vsyncpa [#allocation3], 1 }
 0x266   :  { %176 = vsyncpa [#allocation6], 1 }
 0x267   :  { %177 = vsyncpa [#allocation4], 1 }
 0x268   :  { %178 = vsyncpa [#allocation9], 1 }

</bundles_post_ra>
